<compile_context>
chip_gen: v7x
topology: tpu7x:2x2x1
jax: 0.10.0
libtpu: 0.0.40
codegen_flags: <defaults>
</compile_context>

<pallas_src>
import functools

import jax
import jax.numpy as jnp
from jax import lax
from jax.experimental import pallas as pl
from jax.experimental.pallas import tpu as pltpu


# ----------------------------------------------------------------------------
# Path 1: one-hot MXU gather (small / medium vocab, table resident in VMEM)
# ----------------------------------------------------------------------------
def _onehot_gather_kernel(idx_ref, tbl_ref, out_ref, *, pack, dpad, kchunk, vpad):
    """One grid step: gather rows_blk*pack token embeddings via one-hot matmuls.

    idx_ref: VMEM (rows_blk, pack) int32 -- raw token ids
    tbl_ref: VMEM (vpad, dpad)           -- single padded table, resident
    out_ref: VMEM (rows_blk, pack*dpad)  -- lane-dense (multiple of 128 wide)
    """
    rows = idx_ref.shape[0]
    idx = idx_ref[...]                                   # (rows, pack) int32

    accs = [None] * pack
    # K-tile the contraction so the one-hot temp is (rows, kchunk) regardless
    # of vocab size; chunks / pack are tiny static loops (unrolled at trace).
    for k0 in range(0, vpad, kchunk):
        kc = min(kchunk, vpad - k0)
        col = lax.broadcasted_iota(jnp.int32, (rows, kc), 1) + k0
        tbl_chunk = tbl_ref[pl.ds(k0, kc), :]            # (kc, dpad)
        for p in range(pack):
            hit = col == idx[:, p:p + 1]
            onehot = jnp.where(hit, 1.0, 0.0).astype(tbl_chunk.dtype)
            part = jnp.dot(
                onehot, tbl_chunk,
                preferred_element_type=jnp.float32,
                precision=lax.Precision.HIGHEST,         # exact f32 row copy
            )
            accs[p] = part if accs[p] is None else accs[p] + part

    for p in range(pack):
        out_ref[:, pl.ds(p * dpad, dpad)] = accs[p].astype(out_ref.dtype)


def _onehot_path(idx_flat, weight, n, token_block, onehot_budget_bytes):
    vocab, dim = weight.shape
    itemsize = jnp.dtype(weight.dtype).itemsize

    # Lane-dense output rows: pack narrow dims, pad awkward dims up to 128*k.
    if dim < 128 and 128 % dim == 0:
        pack, dpad = 128 // dim, dim
    else:
        pack, dpad = 1, pl.cdiv(dim, 128) * 128
    vpad = pl.cdiv(vocab, 128) * 128                 # vocab padded to lane tile
    kchunk = min(vpad, 1024)                         # fixed K-tile (mult of 128)

    n_rows = pl.cdiv(n, pack)
    n_rows8 = pl.cdiv(n_rows, 8) * 8
    # rows per grid step: large enough to amortize ~0.35us/step overhead, small
    # enough that the one-hot chunk stays within budget, and (when the input is
    # big enough) giving the grid >=2 steps so both v7x TensorCores get work.
    rows_cap = max(8, (onehot_budget_bytes // (kchunk * 4)) // 8 * 8)
    rows_req = max(8, (token_block // pack) // 8 * 8)
    half_cap = max(8, pl.cdiv(pl.cdiv(n_rows, 2), 8) * 8)
    rows_blk = max(8, min(rows_cap, rows_req, half_cap, n_rows8))
    n_rows_pad = pl.cdiv(n_rows, rows_blk) * rows_blk
    n_pad = n_rows_pad * pack

    if n_pad != n:                                   # pad with token 0; dropped
        idx_flat = jnp.pad(idx_flat, (0, n_pad - n))
    idx2 = idx_flat.reshape(n_rows_pad, pack)

    wp = weight
    if (vpad, dpad) != (vocab, dim):                 # zero-pad rows/cols once
        wp = jnp.pad(weight, ((0, vpad - vocab), (0, dpad - dim)))

    # VMEM budget: resident table + double-buffered idx/out blocks + temps.
    est = (vpad * dpad * itemsize
           + 2 * rows_blk * pack * 4
           + 2 * rows_blk * pack * dpad * itemsize
           + rows_blk * kchunk * 4
           + rows_blk * dpad * 4)
    vmem_limit = int(min(64 * 1024 * 1024, max(32 * 1024 * 1024, 2 * est)))

    kernel = functools.partial(_onehot_gather_kernel, pack=pack, dpad=dpad,
                               kchunk=kchunk, vpad=vpad)

    out = pl.pallas_call(
        kernel,
        out_shape=jax.ShapeDtypeStruct((n_rows_pad, pack * dpad), weight.dtype),
        grid=(n_rows_pad // rows_blk,),
        in_specs=[
            pl.BlockSpec((rows_blk, pack), lambda i: (i, 0)),
            # whole (small) table resident in VMEM once; not double-buffered.
            pl.BlockSpec(memory_space=pltpu.MemorySpace.VMEM),
        ],
        out_specs=pl.BlockSpec((rows_blk, pack * dpad), lambda i: (i, 0)),
        compiler_params=pltpu.CompilerParams(
            dimension_semantics=("parallel",),   # disjoint output tiles
            vmem_limit_bytes=vmem_limit,
        ),
    )(idx2, wp)

    emb = out.reshape(n_rows_pad * pack, dpad)       # metadata reshape
    if n_pad != n:
        emb = emb[:n]
    if dpad != dim:
        emb = emb[:, :dim]
    return emb


# ----------------------------------------------------------------------------
# Path 2: HBM-resident table, per-row DMA gather (larger vocab)
# ----------------------------------------------------------------------------
def _dma_gather_kernel(ids_ref, w_hbm, out_ref, sem, *, rows_blk):
    """One grid step: DMA rows_blk embedding rows HBM -> output VMEM block.

    ids_ref: SMEM (n_pad,) int32 (scalar-prefetched, clamped in-range)
    w_hbm  : ANY  (vocab, dim) table left in HBM
    out_ref: VMEM (rows_blk, dim)
    sem    : single DMA semaphore (all row copies have identical byte counts)
    """
    base = pl.program_id(0) * rows_blk

    def issue(r, carry):
        pltpu.make_async_copy(
            w_hbm.at[ids_ref[base + r]], out_ref.at[r], sem).start()
        return carry

    lax.fori_loop(0, rows_blk, issue, 0)

    def drain(r, carry):
        # Dummy same-shaped descriptor: each wait consumes one row-copy signal.
        pltpu.make_async_copy(w_hbm.at[0], out_ref.at[0], sem).wait()
        return carry

    lax.fori_loop(0, rows_blk, drain, 0)


def _dma_path(idx_flat, weight, n, dma_token_block):
    vocab, dim = weight.shape
    rows_blk = max(8, min(dma_token_block, pl.cdiv(n, 8) * 8) // 8 * 8)
    n_pad = pl.cdiv(n, rows_blk) * rows_blk

    ids = jnp.clip(idx_flat, 0, vocab - 1)           # keep row DMAs in-bounds
    if n_pad != n:
        ids = jnp.pad(ids, (0, n_pad - n))

    kernel = functools.partial(_dma_gather_kernel, rows_blk=rows_blk)
    out = pl.pallas_call(
        kernel,
        out_shape=jax.ShapeDtypeStruct((n_pad, dim), weight.dtype),
        grid_spec=pltpu.PrefetchScalarGridSpec(
            num_scalar_prefetch=1,
            grid=(n_pad // rows_blk,),
            in_specs=[pl.BlockSpec(memory_space=pl.ANY)],   # table stays in HBM
            out_specs=pl.BlockSpec((rows_blk, dim), lambda i, ids: (i, 0)),
            scratch_shapes=[pltpu.SemaphoreType.DMA(())],
        ),
        compiler_params=pltpu.CompilerParams(
            dimension_semantics=("arbitrary",),
        ),
    )(ids, weight)

    return out[:n] if n_pad != n else out


# ----------------------------------------------------------------------------
# Public wrapper: word_embedding.forward
# ----------------------------------------------------------------------------
def word_embedding_forward(indices, weight, *,
                           token_block=4096,
                           onehot_budget_bytes=4 * 1024 * 1024,
                           onehot_max_vocab=2048,
                           dma_token_block=256,
                           force_path=None):
    """Embedding lookup: int indices [*dims] -> [*dims, embedding_dim]."""
    vocab, dim = weight.shape
    n = indices.size
    idx_flat = indices.reshape(-1).astype(jnp.int32)

    path = force_path or ("onehot" if vocab <= onehot_max_vocab else "dma")
    if path == "onehot":
        emb = _onehot_path(idx_flat, weight, n, token_block, onehot_budget_bytes)
    else:
        emb = _dma_path(idx_flat, weight, n, dma_token_block)
    return emb.reshape(*indices.shape, dim)


if __name__ == "__main__":
    key = jax.random.PRNGKey(0)
    k_w1, k_i1, k_w2, k_i2, k_w3, k_i3 = jax.random.split(key, 6)

    # --- config 1: small vocab, narrow dim (pack=4), one-hot MXU path -------
    vocab1, dim1, batch, seq = 64, 32, 2, 8
    weight1 = jax.random.uniform(k_w1, (vocab1, dim1), dtype=jnp.float32,
                                 minval=-1.0, maxval=1.0)   # matches uniform(-1,1) init
    indices1 = jax.random.randint(k_i1, (batch, seq), 0, vocab1, dtype=jnp.int32)
    out1 = jax.block_until_ready(word_embedding_forward(indices1, weight1))
    ref1 = weight1[indices1]
    assert out1.shape == (batch, seq, dim1)
    assert jnp.allclose(out1, ref1, atol=1e-6), "mismatch (one-hot, pack=4)"

    # --- config 2: dim=96 (column-padded to 128), multi-step parallel grid ---
    vocab2, dim2 = 200, 96
    weight2 = jax.random.uniform(k_w2, (vocab2, dim2), dtype=jnp.float32,
                                 minval=-1.0, maxval=1.0)
    indices2 = jax.random.randint(k_i2, (4, 80), 0, vocab2, dtype=jnp.int32)
    out2 = jax.block_until_ready(
        word_embedding_forward(indices2, weight2, token_block=64))
    ref2 = weight2[indices2]
    assert out2.shape == (4, 80, dim2)
    assert jnp.allclose(out2, ref2, atol=1e-6), "mismatch (one-hot, dim pad)"

    # --- config 3: larger vocab -> HBM-resident DMA row-gather path ----------
    vocab3, dim3 = 2500, 64
    weight3 = jax.random.uniform(k_w3, (vocab3, dim3), dtype=jnp.float32,
                                 minval=-1.0, maxval=1.0)
    indices3 = jax.random.randint(k_i3, (2, 16), 0, vocab3, dtype=jnp.int32)
    out3 = jax.block_until_ready(word_embedding_forward(indices3, weight3))
    ref3 = weight3[indices3]
    assert out3.shape == (2, 16, dim3)
    assert jnp.array_equal(out3, ref3), "mismatch (DMA gather path)"

    print("KERNEL_OK")
</pallas_src>

<mosaic_0001>
module attributes {stable_mosaic.version = 11 : i64} {
  func.func @_onehot_gather_kernel(%arg0: i32, %arg1: memref<8x4xi32, #tpu.memory_space<vmem>>, %arg2: memref<128x32xf32, #tpu.memory_space<vmem>>, %arg3: memref<8x128xf32, #tpu.memory_space<vmem>>) attributes {dimension_semantics = [#tpu.dimension_semantics<parallel>], iteration_bounds = array<i64: 1>, scalar_prefetch = 0 : i64, scratch_operands = 0 : i64, tpu.core_type = #tpu.core_type<tc>, window_params = [{transform_indices = @transform_0, window_bounds = array<i64: 8, 4>}, {pipeline_mode = #tpu.pipeline_mode<synchronous>, transform_indices = @transform_1, window_bounds = array<i64: 128, 32>}, {transform_indices = @transform_2, window_bounds = array<i64: 8, 128>}]} {
    %c0 = arith.constant 0 : index
    %c0_0 = arith.constant 0 : index
    %0 = vector.load %arg1[%c0, %c0_0] : memref<8x4xi32, #tpu.memory_space<vmem>>, vector<8x4xi32>
    %1 = tpu.iota {dimensions = array<i32: 1>} : vector<8x128xi32>
    %c0_i32 = arith.constant 0 : i32
    %2 = vector.broadcast %c0_i32 : i32 to vector<8x128xi32>
    %3 = arith.addi %1, %2 : vector<8x128xi32>
    %c0_1 = arith.constant 0 : index
    %c0_2 = arith.constant 0 : index
    %4 = vector.load %arg2[%c0_1, %c0_2] : memref<128x32xf32, #tpu.memory_space<vmem>>, vector<128x32xf32>
    %5 = vector.extract_strided_slice %0 {offsets = [0, 0], sizes = [8, 1], strides = [1, 1]} : vector<8x4xi32> to vector<8x1xi32>
    %6 = vector.broadcast %5 : vector<8x1xi32> to vector<8x128xi32>
    %7 = arith.cmpi eq, %3, %6 : vector<8x128xi32>
    %cst = arith.constant 1.000000e+00 : f32
    %cst_3 = arith.constant 0.000000e+00 : f32
    %8 = vector.broadcast %cst : f32 to vector<8x128xf32>
    %9 = vector.broadcast %cst_3 : f32 to vector<8x128xf32>
    %10 = arith.select %7, %8, %9 : vector<8x128xi1>, vector<8x128xf32>
    %cst_4 = arith.constant dense<0.000000e+00> : vector<8x32xf32>
    %11 = tpu.matmul %10, %4, %cst_4 {dimension_numbers = #tpu.dot_dimension_numbers<[1], [0], [0], [1], [0, 0, 1, 1], [], []>, precision = #tpu.contract_precision<fp32>} : vector<8x128xf32>, vector<128x32xf32>, vector<8x32xf32> -> vector<8x32xf32>
    %12 = vector.extract_strided_slice %0 {offsets = [0, 1], sizes = [8, 1], strides = [1, 1]} : vector<8x4xi32> to vector<8x1xi32>
    %13 = vector.broadcast %12 : vector<8x1xi32> to vector<8x128xi32>
    %14 = arith.cmpi eq, %3, %13 : vector<8x128xi32>
    %cst_5 = arith.constant 1.000000e+00 : f32
    %cst_6 = arith.constant 0.000000e+00 : f32
    %15 = vector.broadcast %cst_5 : f32 to vector<8x128xf32>
    %16 = vector.broadcast %cst_6 : f32 to vector<8x128xf32>
    %17 = arith.select %14, %15, %16 : vector<8x128xi1>, vector<8x128xf32>
    %cst_7 = arith.constant dense<0.000000e+00> : vector<8x32xf32>
    %18 = tpu.matmul %17, %4, %cst_7 {dimension_numbers = #tpu.dot_dimension_numbers<[1], [0], [0], [1], [0, 0, 1, 1], [], []>, precision = #tpu.contract_precision<fp32>} : vector<8x128xf32>, vector<128x32xf32>, vector<8x32xf32> -> vector<8x32xf32>
    %19 = vector.extract_strided_slice %0 {offsets = [0, 2], sizes = [8, 1], strides = [1, 1]} : vector<8x4xi32> to vector<8x1xi32>
    %20 = vector.broadcast %19 : vector<8x1xi32> to vector<8x128xi32>
    %21 = arith.cmpi eq, %3, %20 : vector<8x128xi32>
    %cst_8 = arith.constant 1.000000e+00 : f32
    %cst_9 = arith.constant 0.000000e+00 : f32
    %22 = vector.broadcast %cst_8 : f32 to vector<8x128xf32>
    %23 = vector.broadcast %cst_9 : f32 to vector<8x128xf32>
    %24 = arith.select %21, %22, %23 : vector<8x128xi1>, vector<8x128xf32>
    %cst_10 = arith.constant dense<0.000000e+00> : vector<8x32xf32>
    %25 = tpu.matmul %24, %4, %cst_10 {dimension_numbers = #tpu.dot_dimension_numbers<[1], [0], [0], [1], [0, 0, 1, 1], [], []>, precision = #tpu.contract_precision<fp32>} : vector<8x128xf32>, vector<128x32xf32>, vector<8x32xf32> -> vector<8x32xf32>
    %26 = vector.extract_strided_slice %0 {offsets = [0, 3], sizes = [8, 1], strides = [1, 1]} : vector<8x4xi32> to vector<8x1xi32>
    %27 = vector.broadcast %26 : vector<8x1xi32> to vector<8x128xi32>
    %28 = arith.cmpi eq, %3, %27 : vector<8x128xi32>
    %cst_11 = arith.constant 1.000000e+00 : f32
    %cst_12 = arith.constant 0.000000e+00 : f32
    %29 = vector.broadcast %cst_11 : f32 to vector<8x128xf32>
    %30 = vector.broadcast %cst_12 : f32 to vector<8x128xf32>
    %31 = arith.select %28, %29, %30 : vector<8x128xi1>, vector<8x128xf32>
    %cst_13 = arith.constant dense<0.000000e+00> : vector<8x32xf32>
    %32 = tpu.matmul %31, %4, %cst_13 {dimension_numbers = #tpu.dot_dimension_numbers<[1], [0], [0], [1], [0, 0, 1, 1], [], []>, precision = #tpu.contract_precision<fp32>} : vector<8x128xf32>, vector<128x32xf32>, vector<8x32xf32> -> vector<8x32xf32>
    %c0_14 = arith.constant 0 : index
    %c0_15 = arith.constant 0 : index
    %33 = vector.load %arg3[%c0_14, %c0_15] : memref<8x128xf32, #tpu.memory_space<vmem>>, vector<8x32xf32>
    tpu.vector_store %arg3[%c0_14, %c0_15], %11 {strides = array<i32>} : memref<8x128xf32, #tpu.memory_space<vmem>>, vector<8x32xf32>,
    %c0_16 = arith.constant 0 : index
    %c32 = arith.constant 32 : index
    %34 = vector.load %arg3[%c0_16, %c32] : memref<8x128xf32, #tpu.memory_space<vmem>>, vector<8x32xf32>
    tpu.vector_store %arg3[%c0_16, %c32], %18 {strides = array<i32>} : memref<8x128xf32, #tpu.memory_space<vmem>>, vector<8x32xf32>,
    %c0_17 = arith.constant 0 : index
    %c64 = arith.constant 64 : index
    %35 = vector.load %arg3[%c0_17, %c64] : memref<8x128xf32, #tpu.memory_space<vmem>>, vector<8x32xf32>
    tpu.vector_store %arg3[%c0_17, %c64], %25 {strides = array<i32>} : memref<8x128xf32, #tpu.memory_space<vmem>>, vector<8x32xf32>,
    %c0_18 = arith.constant 0 : index
    %c96 = arith.constant 96 : index
    %36 = vector.load %arg3[%c0_18, %c96] : memref<8x128xf32, #tpu.memory_space<vmem>>, vector<8x32xf32>
    tpu.vector_store %arg3[%c0_18, %c96], %32 {strides = array<i32>} : memref<8x128xf32, #tpu.memory_space<vmem>>, vector<8x32xf32>,
    return
  }
  func.func @transform_0(%arg0: i32) -> (i32, i32) {
    %c0_i32 = arith.constant 0 : i32
    %c0_i32_0 = arith.constant 0 : i32
    return %arg0, %c0_i32 : i32, i32
  }
  func.func @transform_1(%arg0: i32) -> (i32, i32) {
    %c0_i32 = arith.constant 0 : i32
    %c0_i32_0 = arith.constant 0 : i32
    %c0_i32_1 = arith.constant 0 : i32
    return %c0_i32, %c0_i32_0 : i32, i32
  }
  func.func @transform_2(%arg0: i32) -> (i32, i32) {
    %c0_i32 = arith.constant 0 : i32
    %c0_i32_0 = arith.constant 0 : i32
    return %arg0, %c0_i32 : i32, i32
  }
}

</mosaic_0001>

<bundles_post_ra>
// kernel: tpu_custom_call.1
= control target key start
LH: loop header
LB: loop body
LE: loop exit
PB: predicated region body
PF: predicated region fallthrough
CT: control target
= control target key end

     0   :  { %v4542_v3 = vmov 0   ;;  %v4543_v4 = vmov 0.0|0.0   ;;  %s5396_s0 = inlined_call_operand.vmem [shape: s32[8,4], index: 0, kind: input, shape index: {}]   ;;  %s5397_s1 = inlined_call_operand.vmem [shape: f32[128,32], index: 1, kind: input, shape index: {}]   ;;  %s5398_s2 = inlined_call_operand.hbm [shape: f32[8,128], index: 2, kind: output, shape index: {}]  }
   0x1   :  { %v4572_v0 = vld [vmem:[%s5396_s0] sm:$0xff]  ;;  %v16_v2 = vld [vmem:[%s5397_s1 + $0x8] sm:$0xff]  ;;  %4513 = vset.pattern.permute.xlu0 %v4542_v3  ;;  %3885 = vmatprep.subr.bf16.mxu0 %v4543_v4  ;;  %v17_v7 = vld [vmem:[%s5397_s1 + $0x10] sm:$0xff] }
   0x2   :  { %v15_v1 = vld [vmem:[%s5397_s1] sm:$0xff]  ;;  %v40_v6 = vand.u32 4294901760, %v16_v2  ;;  %v18_v8 = vld [vmem:[%s5397_s1 + $0x18] sm:$0xff]  ;;  %32 = vperm.xlu0 %4513, %v4572_v0   ;;  %v43_v9 = vand.u32 4294901760, %v17_v7  ;;  %4029 = vmatprep.subr.bf16.mxu1 %v4543_v4  ;;  %v20_v12 = vld [vmem:[%s5397_s1 + $0x28] sm:$0xff] }
   0x3   :  { %v37_v5 = vand.u32 4294901760, %v15_v1  ;;  %v46_v10 = vand.u32 4294901760, %v18_v8  ;;  %v19_v11 = vld [vmem:[%s5397_s1 + $0x20] sm:$0xff]  ;;  %v52_v16 = vand.u32 4294901760, %v20_v12  ;;  %v21_v17 = vld [vmem:[%s5397_s1 + $0x30] sm:$0xff]  ;;  %v22_v18 = vld [vmem:[%s5397_s1 + $0x38] sm:$0xff] }
   0x4   :  { %v49_v15 = vand.u32 4294901760, %v19_v11 }
   0x5   :  { %v4595_v13 = vpack.c.bf16 %v40_v6, %v37_v5  ;;  %v4598_v14 = vpack.c.bf16 %v46_v10, %v43_v9 }
   0x7   :  { %3887 = vmatpush3.bf16.msra.mxu0 %v4595_v13  ;;  %4031 = vmatpush3.bf16.msra.mxu1 %v4595_v13 }
   0x8   :  { %7 = vsyncpa [#allocation3], 0  ;;  %v4544_v19 = vmov 1   ;;  %3888 = vmatprep.subr.bf16.mxu0 %v4543_v4  ;;  %4032 = vmatprep.subr.bf16.mxu1 %v4543_v4  ;;  %v4610_v20 = vsub.f32 %v15_v1, %v37_v5  ;;  %v4612_v21 = vsub.f32 %v16_v2, %v40_v6  ;;  %v55_v22 = vand.u32 4294901760, %v21_v17  ;;  %v23_v24 = vld [vmem:[%s5397_s1 + $0x40] sm:$0xff]  ;;  %v24_v28 = vld [vmem:[%s5397_s1 + $0x48] sm:$0xff] }
   0x9   :  { %4514 = vset.pattern.permute.xlu0 %v4544_v19  ;;  %v58_v23 = vand.u32 4294901760, %v22_v18  ;;  %v4617_v25 = vsub.f32 %v17_v7, %v43_v9  ;;  %v4619_v26 = vsub.f32 %v18_v8, %v46_v10  ;;  %v4622_v27 = vpack.c.bf16 %v52_v16, %v49_v15  ;;  %v25_v43 = vld [vmem:[%s5397_s1 + $0x50] sm:$0xff]  ;;  %v26_v44 = vld [vmem:[%s5397_s1 + $0x58] sm:$0xff]  ;;  %v27_v60 = vld [vmem:[%s5397_s1 + $0x60] sm:$0xff]  ;;  %s4551_s14 = smov 64   ;;  %s4552_s15 = smov 96  }
   0xa   :  { %672 = vperm.xlu0 %4514, %v4572_v0   ;;  %v129_v29 = vand.u32 4294901760, %v4610_v20  ;;  %v136_v30 = vand.u32 4294901760, %v4612_v21  ;;  %v61_v33 = vand.u32 4294901760, %v23_v24  ;;  %vm4545_vm0 = vmmov 0   ;;  %v28_v61 = vld [vmem:[%s5397_s1 + $0x68] sm:$0xff]  ;;  %s4553_s16 = smov [#allocation2]  }
   0xb   :  { %3890 = vmatpush3.bf16.msra.mxu0 %v4598_v14  ;;  %4034 = vmatpush3.bf16.msra.mxu1 %v4598_v14  ;;  %v143_v31 = vand.u32 4294901760, %v4617_v25  ;;  %v150_v32 = vand.u32 4294901760, %v4619_v26  ;;  %v4546_v34 = vmov 0.0   ;;  %v4644_v37 = vsub.f32 %v19_v11, %v49_v15  ;;  %v30_v15 = vld [vmem:[%s5397_s1 + $0x78] sm:$0xff]  ;;  %s2617_s0 = sshll.u32 %s4553_s16, 4  ;;  %s2618_s0 = int_to_ptr.vmem [resolvable:$true] %s2617_s0 }
   0xc   :  { %3891 = vmatprep.subr.bf16.mxu0 %v4543_v4  ;;  %4035 = vmatprep.subr.bf16.mxu1 %v4543_v4  ;;  %v130_v35 = vsub.f32 %v4610_v20, %v129_v29  ;;  %v137_v36 = vsub.f32 %v4612_v21, %v136_v30  ;;  %v64_v38 = vand.u32 4294901760, %v24_v28  ;;  %v4652_v41 = vsub.f32 %v20_v12, %v52_v16  ;;  %v29_v12 = vld [vmem:[%s5397_s1 + $0x70] sm:$0xff]  ;;  %s4550_s1 = smov 32   ;;  %s4518_s17 = scalar_lea.vmem %s2618_s0, 128 }
   0xd   :  { %3077 = vmatprep.mubr.msk.f32.mxu0 %vm4545_vm0, %v4546_v34  ;;  %3287 = vmatprep.mubr.msk.f32.mxu1 %vm4545_vm0, %v4546_v34  ;;  %v144_v39 = vsub.f32 %v4617_v25, %v143_v31  ;;  %v151_v40 = vsub.f32 %v4619_v26, %v150_v32  ;;  %v4655_v42 = vpack.c.bf16 %v58_v23, %v55_v22  ;;  %v157_v47 = vand.u32 4294901760, %v4644_v37  ;;  %p4519_p0 = scmp.ne.s32.totalorder %s2618_s0, %s4518_s17  ;;  %p4523_p1 = scmp.lt.s32.totalorder %s2618_s0, %s2618_s0 }
   0xe   :  { %v131_v45 = vand.u32 4294901760, %v130_v35  ;;  %v138_v46 = vand.u32 4294901760, %v137_v36  ;;  %v164_v50 = vand.u32 4294901760, %v4652_v41  ;;  %v4673_v53 = vsub.f32 %v21_v17, %v55_v22  ;;  %p4524_p2 = scmp.lt.s32.totalorder %s4518_s17, %s4518_s17 }
   0xf   :  { %3893 = vmatpush3.bf16.msra.mxu0 %v4622_v27  ;;  %4037 = vmatpush3.bf16.msra.mxu1 %v4622_v27  ;;  %v145_v48 = vand.u32 4294901760, %v144_v39  ;;  %v152_v49 = vand.u32 4294901760, %v151_v40  ;;  %v158_v52 = vsub.f32 %v4644_v37, %v157_v47  ;;  %v4675_v54 = vsub.f32 %v22_v18, %v58_v23 }
  0x10   :  { %3894 = vmatprep.subr.bf16.mxu0 %v4543_v4  ;;  %4038 = vmatprep.subr.bf16.mxu1 %v4543_v4  ;;  %v4668_v51 = vpack.c.bf16 %v138_v46, %v131_v45  ;;  %v67_v55 = vand.u32 4294901760, %v25_v43  ;;  %v70_v56 = vand.u32 4294901760, %v26_v44  ;;  %v165_v58 = vsub.f32 %v4652_v41, %v164_v50  ;;  %p4525_p3 = por %p4524_p2, %p4523_p1 }
  0x11   :  { %v4677_v57 = vpack.c.bf16 %v152_v49, %v145_v48  ;;  %v4683_v59 = vpack.c.bf16 %v64_v38, %v61_v33  ;;  %v159_v62 = vand.u32 4294901760, %v158_v52  ;;  %v171_v63 = vand.u32 4294901760, %v4673_v53 }
  0x12   :  { %v178_v1 = vand.u32 4294901760, %v4675_v54  ;;  %v166_v2 = vand.u32 4294901760, %v165_v58  ;;  %v4702_v6 = vsub.f32 %v23_v24, %v61_v33  ;;  %v4704_v7 = vsub.f32 %v24_v28, %v64_v38  ;;  %p4526_p4 = pnand %p4525_p3, %p4519_p0 }
  0x13   :  { %3896 = vmatpush3.bf16.msra.mxu0 %v4655_v42  ;;  %4040 = vmatpush3.bf16.msra.mxu1 %v4655_v42  ;;  %v172_v3 = vsub.f32 %v4673_v53, %v171_v63  ;;  %v4706_v8 = vpack.c.bf16 %v70_v56, %v67_v55  ;;  %v73_v9 = vand.u32 4294901760, %v27_v60  ;;  %v76_v10 = vand.u32 4294901760, %v28_v61 }
  0x14   :  { %3897 = vmatprep.subr.bf16.mxu0 %v4543_v4  ;;  %4041 = vmatprep.subr.bf16.mxu1 %v4543_v4  ;;  %v179_v5 = vsub.f32 %v4675_v54, %v178_v1  ;;  %v4708_v11 = vpack.c.bf16 %v166_v2, %v159_v62  ;;  %v185_v18 = vand.u32 4294901760, %v4702_v6  ;;  %v192_v19 = vand.u32 4294901760, %v4704_v7 }
  0x15   :  { %v173_v16 = vand.u32 4294901760, %v172_v3  ;;  %v4730_v28 = vsub.f32 %v25_v43, %v67_v55  ;;  %v79_v33 = vand.u32 4294901760, %v29_v12  ;;  %v82_v35 = vand.u32 4294901760, %v30_v15 }
  0x16   :  { %v180_v17 = vand.u32 4294901760, %v179_v5  ;;  %v186_v23 = vsub.f32 %v4702_v6, %v185_v18  ;;  %v193_v24 = vsub.f32 %v4704_v7, %v192_v19  ;;  %v4732_v36 = vsub.f32 %v26_v44, %v70_v56 }
  0x17   :  { %3899 = vmatpush3.bf16.msra.mxu0 %v4683_v59  ;;  %4043 = vmatpush3.bf16.msra.mxu1 %v4683_v59  ;;  %v4735_v38 = vpack.c.bf16 %v76_v10, %v73_v9  ;;  %v5404_v45 = vand.u32 4294901760, %v4730_v28  ;;  %v4747_v48 = vsub.f32 %v27_v60, %v73_v9  ;;  %v4749_v49 = vsub.f32 %v28_v61, %v76_v10 }
  0x18   :  { %3900 = vmatprep.subr.bf16.mxu0 %v4543_v4  ;;  %4044 = vmatprep.subr.bf16.mxu1 %v4543_v4  ;;  %v4722_v22 = vpack.c.bf16 %v180_v17, %v173_v16  ;;  %v187_v39 = vand.u32 4294901760, %v186_v23  ;;  %v194_v40 = vand.u32 4294901760, %v193_v24  ;;  %v5403_v43 = vand.u32 4294901760, %v4732_v36 }
  0x19   :  { %v200_v44 = vsub.f32 %v4730_v28, %v5404_v45  ;;  %v4755_v55 = vpack.c.bf16 %v82_v35, %v79_v33  ;;  %v5402_v58 = vand.u32 4294901760, %v4747_v48  ;;  %v5401_v62 = vand.u32 4294901760, %v4749_v49 }
  0x1a   :  { %v4742_v46 = vpack.c.bf16 %v194_v40, %v187_v39  ;;  %v207_v52 = vsub.f32 %v4732_v36, %v5403_v43  ;;  %v4768_v3 = vsub.f32 %v29_v12, %v79_v33  ;;  %v4770_v5 = vsub.f32 %v30_v15, %v82_v35 }
  0x1b   :  { %3902 = vmatpush3.bf16.msra.mxu0 %v4706_v8  ;;  %4046 = vmatpush3.bf16.msra.mxu1 %v4706_v8  ;;  %v201_v56 = vand.u32 4294901760, %v200_v44  ;;  %v214_v61 = vsub.f32 %v4747_v48, %v5402_v58  ;;  %v221_v2 = vsub.f32 %v4749_v49, %v5401_v62  ;;  %v4792_v40 = vpack.c.bf16 %v4612_v21, %v4610_v20 }
  0x1c   :  { %3903 = vmatprep.subr.bf16.mxu0 %v4543_v4  ;;  %4047 = vmatprep.subr.bf16.mxu1 %v4543_v4  ;;  %v208_v60 = vand.u32 4294901760, %v207_v52  ;;  %v5400_v17 = vand.u32 4294901760, %v4768_v3  ;;  %v5399_v23 = vand.u32 4294901760, %v4770_v5  ;;  %v4796_v44 = vpack.c.bf16 %v4619_v26, %v4617_v25 }
  0x1d   :  { %v215_v10 = vand.u32 4294901760, %v214_v61  ;;  %v222_v16 = vand.u32 4294901760, %v221_v2  ;;  %v4800_v52 = vpack.c.bf16 %v4652_v41, %v4644_v37  ;;  %v4812_v61 = vpack.c.bf16 %v4732_v36, %v4730_v28 }
  0x1e   :  { %v4772_v9 = vpack.c.bf16 %v208_v60, %v201_v56  ;;  %v228_v15 = vsub.f32 %v4768_v3, %v5400_v17  ;;  %v235_v24 = vsub.f32 %v4770_v5, %v5399_v23  ;;  %v4804_v56 = vpack.c.bf16 %v4675_v54, %v4673_v53 }
  0x1f   :  { %3905 = vmatpush3.bf16.msra.mxu0 %v4735_v38  ;;  %4049 = vmatpush3.bf16.msra.mxu1 %v4735_v38  ;;  %v4780_v12 = vpack.c.bf16 %v222_v16, %v215_v10  ;;  %v4808_v60 = vpack.c.bf16 %v4704_v7, %v4702_v6  ;;  %v4547_v2 = vmov 2   ;;  %v4817_v10 = vpack.c.bf16 %v4749_v49, %v4747_v48 }
  0x20   :  { %3906 = vmatprep.subr.bf16.mxu0 %v4543_v4  ;;  %4050 = vmatprep.subr.bf16.mxu1 %v4543_v4  ;;  %v229_v33 = vand.u32 4294901760, %v228_v15  ;;  %v236_v35 = vand.u32 4294901760, %v235_v24  ;;  %v4548_v16 = vmov 3   ;;  %v4822_v15 = vpack.c.bf16 %v4770_v5, %v4768_v3 }
  0x21   :  { %4515 = vset.pattern.permute.xlu1 %v4547_v2  ;;  %4517 = vset.pattern.permute.xlu0 %v4548_v16  ;;  %v13_v24 = vlaneseq  ;;  %v4983_v20 = vpack.c.bf16 %v150_v32, %v143_v31  ;;  %v4997_v21 = vpack.c.bf16 %v164_v50, %v157_v47  ;;  %v5009_v25 = vpack.c.bf16 %v178_v1, %v171_v63 }
  0x22   :  { %v4788_v39 = vpack.c.bf16 %v236_v35, %v229_v33  ;;  %1312 = vperm.xlu1 %4515, %v4572_v0   ;;  %v5019_v26 = vpack.c.bf16 %v192_v19, %v185_v18  ;;  %v5407_v32 = vand.u32 4294901760, %v4747_v48  ;;  %v5408_v37 = vand.u32 4294901760, %v4749_v49 }
  0x23   :  { %3908 = vmatpush3.bf16.msra.mxu0 %v4755_v55  ;;  %4052 = vmatpush3.bf16.msra.mxu1 %v4755_v55  ;;  %v4824_v33 = vand.u32 127, %v13_v24  ;;  %v5409_v47 = vand.u32 4294901760, %v4768_v3  ;;  %v5410_v50 = vand.u32 4294901760, %v4770_v5  ;;  %vm2591_vm5 = vcmask 261120  }
  0x24   :  { %3909 = vmatprep.subr.bf16.mxu0 %v4543_v4  ;;  %4053 = vmatprep.subr.bf16.mxu1 %v4543_v4  ;;  %v5039_v41 = vpack.c.bf16 %v5408_v37, %v5407_v32  ;;  %vm2597_vm6 = vcmask 523520   ;;  %vm2603_vm7 = vcmask 785920   ;;  %vm2609_vm8 = vcmask 1048320  }
  0x25   :  { %v5049_v53 = vpack.c.bf16 %v5410_v50, %v5409_v47 }
  0x26   :  { %4516 = vset.pattern.permute.xlu1 %v4548_v16 }
  0x27   :  { %1952 = vperm.xlu1 %4516, %v4572_v0  }
  0x81   :  { %v4826_v35 = vpop.permute.xlu0 %32 }
  0x82   :  { %vm34_vm1 = vcmp.eq.s32.totalorder %v4824_v33, %v4826_v35 }
  0x83   :  { %v35_v2 = vsel %vm34_vm1, 1.0, %v4546_v34 }
  0x84   :  { %v4834_v16 = vsub.f32 %v35_v2, %v35_v2 }
  0x86   :  { %v118_v23 = vand.u32 4294901760, %v4834_v16 }
  0x88   :  { %v119_v17 = vsub.f32 %v4834_v16, %v118_v23 }
  0x89   :  { %v4836_v0 = vpop.permute.xlu0 %672 }
  0x8a   :  { %vm674_vm2 = vcmp.eq.s32.totalorder %v4824_v33, %v4836_v0  ;;  %v120_v2 = vand.u32 4294901760, %v119_v17 }
  0x8b   :  { %v675_v24 = vsel %vm674_vm2, 1.0, %v4546_v34 }
  0x8c   :  { %v4848_v62 = vsub.f32 %v675_v24, %v675_v24  ;;  %3078 = vmatmul.mubr.f32.vlgmr.msra.gmra.mrb[0].mxu0 %v120_v2 }
  0x8d   :  { %3911 = vmatpush3.bf16.msra.mxu0 %v4668_v51  ;;  %3112 = vmatprep.mubr.msk.f32.mxu0 %vm4545_vm0, %v4546_v34 }
  0x8e   :  { %v758_v58 = vand.u32 4294901760, %v4848_v62  ;;  %3912 = vmatprep.subr.bf16.mxu0 %v4543_v4 }
  0x90   :  { %v759_v43 = vsub.f32 %v4848_v62, %v758_v58 }
  0x91   :  { %3914 = vmatpush3.bf16.msra.mxu0 %v4677_v57 }
  0x92   :  { %v760_v45 = vand.u32 4294901760, %v759_v43  ;;  %3915 = vmatprep.subr.bf16.mxu0 %v4543_v4  ;;  %v4971_v43 = vpack.c.bf16 %v136_v30, %v129_v29  ;;  %v5405_v29 = vand.u32 4294901760, %v4730_v28  ;;  %v5406_v30 = vand.u32 4294901760, %v4732_v36 }
  0x94   :  { %3288 = vmatmul.mubr.f32.vlgmr.msra.gmra.mrb[0].mxu1 %v760_v45  ;;  %v4549_v45 = vmov 1.0   ;;  %v5029_v31 = vpack.c.bf16 %v5406_v30, %v5405_v29 }
  0x95   :  { %4055 = vmatpush3.bf16.msra.mxu1 %v4668_v51  ;;  %3322 = vmatprep.mubr.msk.f32.mxu1 %vm4545_vm0, %v4546_v34 }
  0x96   :  { %4056 = vmatprep.subr.bf16.mxu1 %v4543_v4  ;;  %3917 = vmatpush3.bf16.msra.mxu0 %v4708_v11 }
  0x97   :  { %3918 = vmatprep.subr.bf16.mxu0 %v4543_v4 }
  0x99   :  { %4058 = vmatpush3.bf16.msra.mxu1 %v4677_v57 }
  0x9a   :  { %4059 = vmatprep.subr.bf16.mxu1 %v4543_v4  ;;  %3920 = vmatpush3.bf16.msra.mxu0 %v4722_v22 }
  0x9b   :  { %3921 = vmatprep.subr.bf16.mxu0 %v4543_v4 }
  0x9d   :  { %4061 = vmatpush3.bf16.msra.mxu1 %v4708_v11 }
  0x9e   :  { %4062 = vmatprep.subr.bf16.mxu1 %v4543_v4  ;;  %3923 = vmatpush3.bf16.msra.mxu0 %v4742_v46 }
  0x9f   :  { %3924 = vmatprep.subr.bf16.mxu0 %v4543_v4 }
  0xa1   :  { %4064 = vmatpush3.bf16.msra.mxu1 %v4722_v22  ;;  %v5119_v54 = vpop.permute.xlu1 %1312 }
  0xa2   :  { %4065 = vmatprep.subr.bf16.mxu1 %v4543_v4  ;;  %3926 = vmatpush3.bf16.msra.mxu0 %v4772_v9  ;;  %vm1314_vm3 = vcmp.eq.s32.totalorder %v4824_v33, %v5119_v54 }
  0xa3   :  { %3927 = vmatprep.subr.bf16.mxu0 %v4543_v4  ;;  %v1315_v1 = vsel %vm1314_vm3, 1.0, %v4546_v34 }
  0xa4   :  { %v5142_v6 = vsub.f32 %v1315_v1, %v1315_v1 }
  0xa5   :  { %4067 = vmatpush3.bf16.msra.mxu1 %v4742_v46 }
  0xa6   :  { %4068 = vmatprep.subr.bf16.mxu1 %v4543_v4  ;;  %3929 = vmatpush3.bf16.msra.mxu0 %v4780_v12  ;;  %v5130_v63 = vpop.permute.xlu1 %1952  ;;  %v1398_v18 = vand.u32 4294901760, %v5142_v6 }
  0xa7   :  { %3930 = vmatprep.subr.bf16.mxu0 %v4543_v4  ;;  %vm1954_vm4 = vcmp.eq.s32.totalorder %v4824_v33, %v5130_v63 }
  0xa8   :  { %v1955_v7 = vsel %vm1954_vm4, 1.0, %v4546_v34  ;;  %v1399_v28 = vsub.f32 %v5142_v6, %v1398_v18 }
  0xa9   :  { %4070 = vmatpush3.bf16.msra.mxu1 %v4772_v9  ;;  %v5154_v19 = vsub.f32 %v1955_v7, %v1955_v7 }
  0xaa   :  { %4071 = vmatprep.subr.bf16.mxu1 %v4543_v4  ;;  %3932 = vmatpush3.bf16.msra.mxu0 %v4788_v39  ;;  %v1400_v48 = vand.u32 4294901760, %v1399_v28 }
  0xab   :  { %3933 = vmatprep.subr.bf16.mxu0 %v4543_v4  ;;  %v2038_v36 = vand.u32 4294901760, %v5154_v19 }
  0xad   :  { %4073 = vmatpush3.bf16.msra.mxu1 %v4780_v12  ;;  %3113 = vmatmul.mubr.msk.f32.vlgmr.msra.gmra.mrb[0].mxu0 %vm34_vm1, %v4549_v45  ;;  %v2039_v49 = vsub.f32 %v5154_v19, %v2038_v36 }
  0xae   :  { %4074 = vmatprep.subr.bf16.mxu1 %v4543_v4  ;;  %3935 = vmatpush3.bf16.msra.mxu0 %v4792_v40 }
  0xaf   :  { %3147 = vmatprep.mubr.msk.f32.mxu0 %vm4545_vm0, %v4546_v34  ;;  %3936 = vmatprep.subr.bf16.mxu0 %v4543_v4 }
  0xb1   :  { %4076 = vmatpush3.bf16.msra.mxu1 %v4788_v39 }
  0xb2   :  { %4077 = vmatprep.subr.bf16.mxu1 %v4543_v4  ;;  %3938 = vmatpush3.bf16.msra.mxu0 %v4796_v44 }
  0xb3   :  { %3939 = vmatprep.subr.bf16.mxu0 %v4543_v4 }
  0xb4   :  { %3323 = vmatmul.mubr.msk.f32.vlgmr.msra.gmra.mrb[0].mxu1 %vm674_vm2, %v4549_v45 }
  0xb5   :  { %4079 = vmatpush3.bf16.msra.mxu1 %v4792_v40  ;;  %3357 = vmatprep.mubr.msk.f32.mxu1 %vm4545_vm0, %v4546_v34 }
  0xb6   :  { %4080 = vmatprep.subr.bf16.mxu1 %v4543_v4  ;;  %3941 = vmatpush3.bf16.msra.mxu0 %v4800_v52 }
  0xb7   :  { %3942 = vmatprep.subr.bf16.mxu0 %v4543_v4 }
  0xb9   :  { %4082 = vmatpush3.bf16.msra.mxu1 %v4796_v44 }
  0xba   :  { %4083 = vmatprep.subr.bf16.mxu1 %v4543_v4  ;;  %3944 = vmatpush3.bf16.msra.mxu0 %v4804_v56 }
  0xbb   :  { %3945 = vmatprep.subr.bf16.mxu0 %v4543_v4 }
  0xbd   :  { %4085 = vmatpush3.bf16.msra.mxu1 %v4800_v52 }
  0xbe   :  { %4086 = vmatprep.subr.bf16.mxu1 %v4543_v4  ;;  %3947 = vmatpush3.bf16.msra.mxu0 %v4808_v60 }
  0xbf   :  { %3948 = vmatprep.subr.bf16.mxu0 %v4543_v4 }
  0xc1   :  { %4088 = vmatpush3.bf16.msra.mxu1 %v4804_v56 }
  0xc2   :  { %4089 = vmatprep.subr.bf16.mxu1 %v4543_v4  ;;  %3950 = vmatpush3.bf16.msra.mxu0 %v4812_v61 }
  0xc3   :  { %3951 = vmatprep.subr.bf16.mxu0 %v4543_v4 }
  0xc5   :  { %4091 = vmatpush3.bf16.msra.mxu1 %v4808_v60 }
  0xc6   :  { %4092 = vmatprep.subr.bf16.mxu1 %v4543_v4  ;;  %3953 = vmatpush3.bf16.msra.mxu0 %v4817_v10 }
  0xc7   :  { %3954 = vmatprep.subr.bf16.mxu0 %v4543_v4 }
  0xc9   :  { %4094 = vmatpush3.bf16.msra.mxu1 %v4812_v61 }
  0xca   :  { %4095 = vmatprep.subr.bf16.mxu1 %v4543_v4  ;;  %3956 = vmatpush3.bf16.msra.mxu0 %v4822_v15 }
  0xcb   :  { %3957 = vmatprep.subr.bf16.mxu0 %v4543_v4 }
  0xcd   :  { %4097 = vmatpush3.bf16.msra.mxu1 %v4817_v10  ;;  %3148 = vmatmul.mubr.f32.vlgmr.msra.gmra.mrb[0].mxu0 %v4834_v16 }
  0xce   :  { %4098 = vmatprep.subr.bf16.mxu1 %v4543_v4  ;;  %3959 = vmatpush3.bf16.msra.mxu0 %v4595_v13 }
  0xcf   :  { %3182 = vmatprep.mubr.msk.f32.mxu0 %vm4545_vm0, %v4546_v34  ;;  %3960 = vmatprep.subr.bf16.mxu0 %v4543_v4 }
  0xd1   :  { %4100 = vmatpush3.bf16.msra.mxu1 %v4822_v15 }
  0xd2   :  { %4101 = vmatprep.subr.bf16.mxu1 %v4543_v4  ;;  %3962 = vmatpush3.bf16.msra.mxu0 %v4598_v14 }
  0xd3   :  { %3963 = vmatprep.subr.bf16.mxu0 %v4543_v4 }
  0xd4   :  { %3358 = vmatmul.mubr.f32.vlgmr.msra.gmra.mrb[0].mxu1 %v4848_v62 }
  0xd5   :  { %4103 = vmatpush3.bf16.msra.mxu1 %v4595_v13  ;;  %3392 = vmatprep.mubr.msk.f32.mxu1 %vm4545_vm0, %v4546_v34 }
  0xd6   :  { %4104 = vmatprep.subr.bf16.mxu1 %v4543_v4  ;;  %3965 = vmatpush3.bf16.msra.mxu0 %v4622_v27 }
  0xd7   :  { %3966 = vmatprep.subr.bf16.mxu0 %v4543_v4 }
  0xd9   :  { %4106 = vmatpush3.bf16.msra.mxu1 %v4598_v14 }
  0xda   :  { %4107 = vmatprep.subr.bf16.mxu1 %v4543_v4  ;;  %3968 = vmatpush3.bf16.msra.mxu0 %v4655_v42 }
  0xdb   :  { %3969 = vmatprep.subr.bf16.mxu0 %v4543_v4 }
  0xdd   :  { %4109 = vmatpush3.bf16.msra.mxu1 %v4622_v27 }
  0xde   :  { %4110 = vmatprep.subr.bf16.mxu1 %v4543_v4  ;;  %3971 = vmatpush3.bf16.msra.mxu0 %v4683_v59 }
  0xdf   :  { %3972 = vmatprep.subr.bf16.mxu0 %v4543_v4 }
  0xe1   :  { %4112 = vmatpush3.bf16.msra.mxu1 %v4655_v42 }
  0xe2   :  { %4113 = vmatprep.subr.bf16.mxu1 %v4543_v4  ;;  %3974 = vmatpush3.bf16.msra.mxu0 %v4706_v8 }
  0xe3   :  { %3975 = vmatprep.subr.bf16.mxu0 %v4543_v4 }
  0xe5   :  { %4115 = vmatpush3.bf16.msra.mxu1 %v4683_v59 }
  0xe6   :  { %4116 = vmatprep.subr.bf16.mxu1 %v4543_v4  ;;  %3977 = vmatpush3.bf16.msra.mxu0 %v4735_v38 }
  0xe7   :  { %3978 = vmatprep.subr.bf16.mxu0 %v4543_v4 }
  0xe9   :  { %4118 = vmatpush3.bf16.msra.mxu1 %v4706_v8 }
  0xea   :  { %4119 = vmatprep.subr.bf16.mxu1 %v4543_v4  ;;  %3980 = vmatpush3.bf16.msra.mxu0 %v4755_v55 }
  0xeb   :  { %3981 = vmatprep.subr.bf16.mxu0 %v4543_v4 }
  0xed   :  { %4121 = vmatpush3.bf16.msra.mxu1 %v4735_v38  ;;  %3183 = vmatmul.mubr.f32.vlgmr.msra.gmra.mrb[0].mxu0 %v118_v23 }
  0xee   :  { %4122 = vmatprep.subr.bf16.mxu1 %v4543_v4  ;;  %3983 = vmatpush3.bf16.msra.mxu0 %v4971_v43 }
  0xef   :  { %3217 = vmatprep.mubr.msk.f32.mxu0 %vm4545_vm0, %v4546_v34  ;;  %3984 = vmatprep.subr.bf16.mxu0 %v4543_v4 }
  0xf1   :  { %4124 = vmatpush3.bf16.msra.mxu1 %v4755_v55 }
  0xf2   :  { %4125 = vmatprep.subr.bf16.mxu1 %v4543_v4  ;;  %3986 = vmatpush3.bf16.msra.mxu0 %v4983_v20 }
  0xf3   :  { %3987 = vmatprep.subr.bf16.mxu0 %v4543_v4 }
  0xf4   :  { %3393 = vmatmul.mubr.f32.vlgmr.msra.gmra.mrb[0].mxu1 %v758_v58  ;;  %v2040_v58 = vand.u32 4294901760, %v2039_v49 }
  0xf5   :  { %4127 = vmatpush3.bf16.msra.mxu1 %v4971_v43  ;;  %3427 = vmatprep.mubr.msk.f32.mxu1 %vm4545_vm0, %v4546_v34 }
  0xf6   :  { %4128 = vmatprep.subr.bf16.mxu1 %v4543_v4  ;;  %3989 = vmatpush3.bf16.msra.mxu0 %v4997_v21 }
  0xf7   :  { %3990 = vmatprep.subr.bf16.mxu0 %v4543_v4 }
  0xf9   :  { %4130 = vmatpush3.bf16.msra.mxu1 %v4983_v20 }
  0xfa   :  { %4131 = vmatprep.subr.bf16.mxu1 %v4543_v4  ;;  %3992 = vmatpush3.bf16.msra.mxu0 %v5009_v25 }
  0xfb   :  { %3993 = vmatprep.subr.bf16.mxu0 %v4543_v4 }
  0xfd   :  { %4133 = vmatpush3.bf16.msra.mxu1 %v4997_v21 }
  0xfe   :  { %4134 = vmatprep.subr.bf16.mxu1 %v4543_v4  ;;  %3995 = vmatpush3.bf16.msra.mxu0 %v5019_v26 }
  0xff   :  { %3996 = vmatprep.subr.bf16.mxu0 %v4543_v4 }
 0x101   :  { %4136 = vmatpush3.bf16.msra.mxu1 %v5009_v25 }
 0x102   :  { %4137 = vmatprep.subr.bf16.mxu1 %v4543_v4  ;;  %3998 = vmatpush3.bf16.msra.mxu0 %v5029_v31 }
 0x103   :  { %3999 = vmatprep.subr.bf16.mxu0 %v4543_v4 }
 0x105   :  { %4139 = vmatpush3.bf16.msra.mxu1 %v5019_v26 }
 0x106   :  { %4140 = vmatprep.subr.bf16.mxu1 %v4543_v4  ;;  %4001 = vmatpush3.bf16.msra.mxu0 %v5039_v41 }
 0x107   :  { %4002 = vmatprep.subr.bf16.mxu0 %v4543_v4 }
 0x109   :  { %4142 = vmatpush3.bf16.msra.mxu1 %v5029_v31 }
 0x10a   :  { %4143 = vmatprep.subr.bf16.mxu1 %v4543_v4  ;;  %4004 = vmatpush3.bf16.msra.mxu0 %v5049_v53 }
 0x10b   :  { %4005 = vmatprep.subr.bf16.mxu0 %v4543_v4 }
 0x10d   :  { %4145 = vmatpush3.bf16.msra.mxu1 %v5039_v41  ;;  %3218 = vmatmul.mubr.msk.f32.vlgmr.msra.gmra.mrb[0].mxu0 %vm34_vm1, %v4549_v45 }
 0x10e   :  { %4146 = vmatprep.subr.bf16.mxu1 %v4543_v4  ;;  %4007 = vmatpush3.bf16.msra.mxu0 %v4595_v13 }
 0x10f   :  { %3252 = vmatprep.mubr.msk.f32.mxu0 %vm4545_vm0, %v4546_v34  ;;  %4008 = vmatprep.subr.bf16.mxu0 %v4543_v4 }
 0x111   :  { %4148 = vmatpush3.bf16.msra.mxu1 %v5049_v53 }
 0x112   :  { %4149 = vmatprep.subr.bf16.mxu1 %v4543_v4  ;;  %4010 = vmatpush3.bf16.msra.mxu0 %v4598_v14 }
 0x113   :  { %4011 = vmatprep.subr.bf16.mxu0 %v4543_v4 }
 0x114   :  { %3428 = vmatmul.mubr.msk.f32.vlgmr.msra.gmra.mrb[0].mxu1 %vm674_vm2, %v4549_v45 }
 0x115   :  { %4151 = vmatpush3.bf16.msra.mxu1 %v4595_v13  ;;  %3462 = vmatprep.mubr.msk.f32.mxu1 %vm4545_vm0, %v4546_v34 }
 0x116   :  { %4152 = vmatprep.subr.bf16.mxu1 %v4543_v4  ;;  %4013 = vmatpush3.bf16.msra.mxu0 %v4622_v27 }
 0x117   :  { %4014 = vmatprep.subr.bf16.mxu0 %v4543_v4 }
 0x119   :  { %4154 = vmatpush3.bf16.msra.mxu1 %v4598_v14 }
 0x11a   :  { %4155 = vmatprep.subr.bf16.mxu1 %v4543_v4  ;;  %4016 = vmatpush3.bf16.msra.mxu0 %v4655_v42 }
 0x11b   :  { %4017 = vmatprep.subr.bf16.mxu0 %v4543_v4 }
 0x11d   :  { %4157 = vmatpush3.bf16.msra.mxu1 %v4622_v27 }
 0x11e   :  { %4158 = vmatprep.subr.bf16.mxu1 %v4543_v4  ;;  %4019 = vmatpush3.bf16.msra.mxu0 %v4683_v59 }
 0x11f   :  { %4020 = vmatprep.subr.bf16.mxu0 %v4543_v4 }
 0x121   :  { %4160 = vmatpush3.bf16.msra.mxu1 %v4655_v42 }
 0x122   :  { %4161 = vmatprep.subr.bf16.mxu1 %v4543_v4  ;;  %4022 = vmatpush3.bf16.msra.mxu0 %v4706_v8 }
 0x123   :  { %4023 = vmatprep.subr.bf16.mxu0 %v4543_v4 }
 0x125   :  { %4163 = vmatpush3.bf16.msra.mxu1 %v4683_v59 }
 0x126   :  { %4164 = vmatprep.subr.bf16.mxu1 %v4543_v4  ;;  %4025 = vmatpush3.bf16.msra.mxu0 %v4735_v38 }
 0x127   :  { %4026 = vmatprep.subr.bf16.mxu0 %v4543_v4 }
 0x129   :  { %4166 = vmatpush3.bf16.msra.mxu1 %v4706_v8 }
 0x12a   :  { %4167 = vmatprep.subr.bf16.mxu1 %v4543_v4  ;;  %4028 = vmatpush3.bf16.msra.mxu0 %v4755_v55 }
 0x12b   :  { %4173 = vmatprep.subr.bf16.mxu0 %v4543_v4 }
 0x12d   :  { %4169 = vmatpush3.bf16.msra.mxu1 %v4735_v38  ;;  %3253 = vmatmul.mubr.msk.f32.vlgmr.msra.gmra.mrb[0].mxu0 %vm34_vm1, %v4549_v45 }
 0x12e   :  { %4170 = vmatprep.subr.bf16.mxu1 %v4543_v4  ;;  %4175 = vmatpush3.bf16.msra.mxu0 %v4595_v13 }
 0x12f   :  { %3497 = vmatprep.mubr.msk.f32.mxu0 %vm4545_vm0, %v4546_v34  ;;  %4176 = vmatprep.subr.bf16.mxu0 %v4543_v4 }
 0x131   :  { %4172 = vmatpush3.bf16.msra.mxu1 %v4755_v55 }
 0x132   :  { %4317 = vmatprep.subr.bf16.mxu1 %v4543_v4  ;;  %4178 = vmatpush3.bf16.msra.mxu0 %v4598_v14 }
 0x133   :  { %4179 = vmatprep.subr.bf16.mxu0 %v4543_v4 }
 0x134   :  { %3463 = vmatmul.mubr.msk.f32.vlgmr.msra.gmra.mrb[0].mxu1 %vm674_vm2, %v4549_v45 }
 0x135   :  { %4319 = vmatpush3.bf16.msra.mxu1 %v4595_v13  ;;  %3707 = vmatprep.mubr.msk.f32.mxu1 %vm4545_vm0, %v4546_v34 }
 0x136   :  { %4320 = vmatprep.subr.bf16.mxu1 %v4543_v4  ;;  %4181 = vmatpush3.bf16.msra.mxu0 %v4622_v27 }
 0x137   :  { %4182 = vmatprep.subr.bf16.mxu0 %v4543_v4 }
 0x139   :  { %4322 = vmatpush3.bf16.msra.mxu1 %v4598_v14 }
 0x13a   :  { %4323 = vmatprep.subr.bf16.mxu1 %v4543_v4  ;;  %4184 = vmatpush3.bf16.msra.mxu0 %v4655_v42 }
 0x13b   :  { %4185 = vmatprep.subr.bf16.mxu0 %v4543_v4 }
 0x13d   :  { %4325 = vmatpush3.bf16.msra.mxu1 %v4622_v27 }
 0x13e   :  { %4326 = vmatprep.subr.bf16.mxu1 %v4543_v4  ;;  %4187 = vmatpush3.bf16.msra.mxu0 %v4683_v59 }
 0x13f   :  { %4188 = vmatprep.subr.bf16.mxu0 %v4543_v4 }
 0x141   :  { %4328 = vmatpush3.bf16.msra.mxu1 %v4655_v42 }
 0x142   :  { %4329 = vmatprep.subr.bf16.mxu1 %v4543_v4  ;;  %4190 = vmatpush3.bf16.msra.mxu0 %v4706_v8 }
 0x143   :  { %4191 = vmatprep.subr.bf16.mxu0 %v4543_v4 }
 0x145   :  { %4331 = vmatpush3.bf16.msra.mxu1 %v4683_v59 }
 0x146   :  { %4332 = vmatprep.subr.bf16.mxu1 %v4543_v4  ;;  %4193 = vmatpush3.bf16.msra.mxu0 %v4735_v38 }
 0x147   :  { %4194 = vmatprep.subr.bf16.mxu0 %v4543_v4 }
 0x149   :  { %4334 = vmatpush3.bf16.msra.mxu1 %v4706_v8 }
 0x14a   :  { %4335 = vmatprep.subr.bf16.mxu1 %v4543_v4  ;;  %4196 = vmatpush3.bf16.msra.mxu0 %v4755_v55 }
 0x14b   :  { %4197 = vmatprep.subr.bf16.mxu0 %v4543_v4 }
 0x14d   :  { %4337 = vmatpush3.bf16.msra.mxu1 %v4735_v38  ;;  %3498 = vmatmul.mubr.f32.vlgmr.msra.gmra.mrb[2].mxu0 %v1400_v48 }
 0x14e   :  { %4338 = vmatprep.subr.bf16.mxu1 %v4543_v4  ;;  %4199 = vmatpush3.bf16.msra.mxu0 %v4668_v51 }
 0x14f   :  { %3532 = vmatprep.mubr.msk.f32.mxu0 %vm4545_vm0, %v4546_v34  ;;  %4200 = vmatprep.subr.bf16.mxu0 %v4543_v4 }
 0x151   :  { %4340 = vmatpush3.bf16.msra.mxu1 %v4755_v55 }
 0x152   :  { %4341 = vmatprep.subr.bf16.mxu1 %v4543_v4  ;;  %4202 = vmatpush3.bf16.msra.mxu0 %v4677_v57 }
 0x153   :  { %4203 = vmatprep.subr.bf16.mxu0 %v4543_v4 }
 0x154   :  { %3708 = vmatmul.mubr.f32.vlgmr.msra.gmra.mrb[2].mxu1 %v2040_v58 }
 0x155   :  { %4343 = vmatpush3.bf16.msra.mxu1 %v4668_v51  ;;  %3742 = vmatprep.mubr.msk.f32.mxu1 %vm4545_vm0, %v4546_v34 }
 0x156   :  { %4344 = vmatprep.subr.bf16.mxu1 %v4543_v4  ;;  %4205 = vmatpush3.bf16.msra.mxu0 %v4708_v11 }
 0x157   :  { %4206 = vmatprep.subr.bf16.mxu0 %v4543_v4 }
 0x159   :  { %4346 = vmatpush3.bf16.msra.mxu1 %v4677_v57 }
 0x15a   :  { %4347 = vmatprep.subr.bf16.mxu1 %v4543_v4  ;;  %4208 = vmatpush3.bf16.msra.mxu0 %v4722_v22 }
 0x15b   :  { %4209 = vmatprep.subr.bf16.mxu0 %v4543_v4 }
 0x15d   :  { %4349 = vmatpush3.bf16.msra.mxu1 %v4708_v11 }
 0x15e   :  { %4350 = vmatprep.subr.bf16.mxu1 %v4543_v4  ;;  %4211 = vmatpush3.bf16.msra.mxu0 %v4742_v46 }
 0x15f   :  { %4212 = vmatprep.subr.bf16.mxu0 %v4543_v4 }
 0x161   :  { %4352 = vmatpush3.bf16.msra.mxu1 %v4722_v22 }
 0x162   :  { %4353 = vmatprep.subr.bf16.mxu1 %v4543_v4  ;;  %4214 = vmatpush3.bf16.msra.mxu0 %v4772_v9 }
 0x163   :  { %4215 = vmatprep.subr.bf16.mxu0 %v4543_v4 }
 0x165   :  { %4355 = vmatpush3.bf16.msra.mxu1 %v4742_v46 }
 0x166   :  { %4356 = vmatprep.subr.bf16.mxu1 %v4543_v4  ;;  %4217 = vmatpush3.bf16.msra.mxu0 %v4780_v12 }
 0x167   :  { %4218 = vmatprep.subr.bf16.mxu0 %v4543_v4 }
 0x169   :  { %4358 = vmatpush3.bf16.msra.mxu1 %v4772_v9 }
 0x16a   :  { %4359 = vmatprep.subr.bf16.mxu1 %v4543_v4  ;;  %4220 = vmatpush3.bf16.msra.mxu0 %v4788_v39 }
 0x16b   :  { %4221 = vmatprep.subr.bf16.mxu0 %v4543_v4 }
 0x16d   :  { %4361 = vmatpush3.bf16.msra.mxu1 %v4780_v12  ;;  %3533 = vmatmul.mubr.msk.f32.vlgmr.msra.gmra.mrb[2].mxu0 %vm1314_vm3, %v4549_v45 }
 0x16e   :  { %4362 = vmatprep.subr.bf16.mxu1 %v4543_v4  ;;  %4223 = vmatpush3.bf16.msra.mxu0 %v4792_v40 }
 0x16f   :  { %3567 = vmatprep.mubr.msk.f32.mxu0 %vm4545_vm0, %v4546_v34  ;;  %4224 = vmatprep.subr.bf16.mxu0 %v4543_v4 }
 0x171   :  { %4364 = vmatpush3.bf16.msra.mxu1 %v4788_v39 }
 0x172   :  { %4365 = vmatprep.subr.bf16.mxu1 %v4543_v4  ;;  %4226 = vmatpush3.bf16.msra.mxu0 %v4796_v44 }
 0x173   :  { %4227 = vmatprep.subr.bf16.mxu0 %v4543_v4 }
 0x174   :  { %3743 = vmatmul.mubr.msk.f32.vlgmr.msra.gmra.mrb[2].mxu1 %vm1954_vm4, %v4549_v45 }
 0x175   :  { %4367 = vmatpush3.bf16.msra.mxu1 %v4792_v40  ;;  %3777 = vmatprep.mubr.msk.f32.mxu1 %vm4545_vm0, %v4546_v34 }
 0x176   :  { %4368 = vmatprep.subr.bf16.mxu1 %v4543_v4  ;;  %4229 = vmatpush3.bf16.msra.mxu0 %v4800_v52 }
 0x177   :  { %4230 = vmatprep.subr.bf16.mxu0 %v4543_v4 }
 0x179   :  { %4370 = vmatpush3.bf16.msra.mxu1 %v4796_v44 }
 0x17a   :  { %4371 = vmatprep.subr.bf16.mxu1 %v4543_v4  ;;  %4232 = vmatpush3.bf16.msra.mxu0 %v4804_v56 }
 0x17b   :  { %4233 = vmatprep.subr.bf16.mxu0 %v4543_v4 }
 0x17d   :  { %4373 = vmatpush3.bf16.msra.mxu1 %v4800_v52 }
 0x17e   :  { %4374 = vmatprep.subr.bf16.mxu1 %v4543_v4  ;;  %4235 = vmatpush3.bf16.msra.mxu0 %v4808_v60 }
 0x17f   :  { %4236 = vmatprep.subr.bf16.mxu0 %v4543_v4 }
 0x181   :  { %4376 = vmatpush3.bf16.msra.mxu1 %v4804_v56 }
 0x182   :  { %4377 = vmatprep.subr.bf16.mxu1 %v4543_v4  ;;  %4238 = vmatpush3.bf16.msra.mxu0 %v4812_v61 }
 0x183   :  { %4239 = vmatprep.subr.bf16.mxu0 %v4543_v4 }
 0x185   :  { %4379 = vmatpush3.bf16.msra.mxu1 %v4808_v60 }
 0x186   :  { %4380 = vmatprep.subr.bf16.mxu1 %v4543_v4  ;;  %4241 = vmatpush3.bf16.msra.mxu0 %v4817_v10 }
 0x187   :  { %4242 = vmatprep.subr.bf16.mxu0 %v4543_v4 }
 0x189   :  { %4382 = vmatpush3.bf16.msra.mxu1 %v4812_v61 }
 0x18a   :  { %4383 = vmatprep.subr.bf16.mxu1 %v4543_v4  ;;  %4244 = vmatpush3.bf16.msra.mxu0 %v4822_v15 }
 0x18b   :  { %4245 = vmatprep.subr.bf16.mxu0 %v4543_v4 }
 0x18d   :  { %4385 = vmatpush3.bf16.msra.mxu1 %v4817_v10  ;;  %3568 = vmatmul.mubr.f32.vlgmr.msra.gmra.mrb[2].mxu0 %v5142_v6 }
 0x18e   :  { %4386 = vmatprep.subr.bf16.mxu1 %v4543_v4  ;;  %4247 = vmatpush3.bf16.msra.mxu0 %v4595_v13 }
 0x18f   :  { %3602 = vmatprep.mubr.msk.f32.mxu0 %vm4545_vm0, %v4546_v34  ;;  %4248 = vmatprep.subr.bf16.mxu0 %v4543_v4 }
 0x191   :  { %4388 = vmatpush3.bf16.msra.mxu1 %v4822_v15 }
 0x192   :  { %4389 = vmatprep.subr.bf16.mxu1 %v4543_v4  ;;  %4250 = vmatpush3.bf16.msra.mxu0 %v4598_v14 }
 0x193   :  { %4251 = vmatprep.subr.bf16.mxu0 %v4543_v4 }
 0x194   :  { %3778 = vmatmul.mubr.f32.vlgmr.msra.gmra.mrb[2].mxu1 %v5154_v19 }
 0x195   :  { %4391 = vmatpush3.bf16.msra.mxu1 %v4595_v13  ;;  %3812 = vmatprep.mubr.msk.f32.mxu1 %vm4545_vm0, %v4546_v34 }
 0x196   :  { %4392 = vmatprep.subr.bf16.mxu1 %v4543_v4  ;;  %4253 = vmatpush3.bf16.msra.mxu0 %v4622_v27 }
 0x197   :  { %4254 = vmatprep.subr.bf16.mxu0 %v4543_v4 }
 0x199   :  { %4394 = vmatpush3.bf16.msra.mxu1 %v4598_v14 }
 0x19a   :  { %4395 = vmatprep.subr.bf16.mxu1 %v4543_v4  ;;  %4256 = vmatpush3.bf16.msra.mxu0 %v4655_v42 }
 0x19b   :  { %4257 = vmatprep.subr.bf16.mxu0 %v4543_v4 }
 0x19d   :  { %4397 = vmatpush3.bf16.msra.mxu1 %v4622_v27 }
 0x19e   :  { %4398 = vmatprep.subr.bf16.mxu1 %v4543_v4  ;;  %4259 = vmatpush3.bf16.msra.mxu0 %v4683_v59 }
 0x19f   :  { %4260 = vmatprep.subr.bf16.mxu0 %v4543_v4 }
 0x1a1   :  { %4400 = vmatpush3.bf16.msra.mxu1 %v4655_v42 }
 0x1a2   :  { %4401 = vmatprep.subr.bf16.mxu1 %v4543_v4  ;;  %4262 = vmatpush3.bf16.msra.mxu0 %v4706_v8 }
 0x1a3   :  { %4263 = vmatprep.subr.bf16.mxu0 %v4543_v4 }
 0x1a5   :  { %4403 = vmatpush3.bf16.msra.mxu1 %v4683_v59 }
 0x1a6   :  { %4404 = vmatprep.subr.bf16.mxu1 %v4543_v4  ;;  %4265 = vmatpush3.bf16.msra.mxu0 %v4735_v38 }
 0x1a7   :  { %4266 = vmatprep.subr.bf16.mxu0 %v4543_v4 }
 0x1a9   :  { %4406 = vmatpush3.bf16.msra.mxu1 %v4706_v8 }
 0x1aa   :  { %4407 = vmatprep.subr.bf16.mxu1 %v4543_v4  ;;  %4268 = vmatpush3.bf16.msra.mxu0 %v4755_v55 }
 0x1ab   :  { %4269 = vmatprep.subr.bf16.mxu0 %v4543_v4 }
 0x1ad   :  { %4409 = vmatpush3.bf16.msra.mxu1 %v4735_v38  ;;  %3603 = vmatmul.mubr.f32.vlgmr.msra.gmra.mrb[2].mxu0 %v1398_v18 }
 0x1ae   :  { %4410 = vmatprep.subr.bf16.mxu1 %v4543_v4  ;;  %4271 = vmatpush3.bf16.msra.mxu0 %v4971_v43 }
 0x1af   :  { %3637 = vmatprep.mubr.msk.f32.mxu0 %vm4545_vm0, %v4546_v34  ;;  %4272 = vmatprep.subr.bf16.mxu0 %v4543_v4 }
 0x1b1   :  { %4412 = vmatpush3.bf16.msra.mxu1 %v4755_v55 }
 0x1b2   :  { %4413 = vmatprep.subr.bf16.mxu1 %v4543_v4  ;;  %4274 = vmatpush3.bf16.msra.mxu0 %v4983_v20 }
 0x1b3   :  { %4275 = vmatprep.subr.bf16.mxu0 %v4543_v4 }
 0x1b4   :  { %3813 = vmatmul.mubr.f32.vlgmr.msra.gmra.mrb[2].mxu1 %v2038_v36 }
 0x1b5   :  { %4415 = vmatpush3.bf16.msra.mxu1 %v4971_v43  ;;  %3847 = vmatprep.mubr.msk.f32.mxu1 %vm4545_vm0, %v4546_v34 }
 0x1b6   :  { %4416 = vmatprep.subr.bf16.mxu1 %v4543_v4  ;;  %4277 = vmatpush3.bf16.msra.mxu0 %v4997_v21 }
 0x1b7   :  { %4278 = vmatprep.subr.bf16.mxu0 %v4543_v4 }
 0x1b9   :  { %4418 = vmatpush3.bf16.msra.mxu1 %v4983_v20 }
 0x1ba   :  { %4419 = vmatprep.subr.bf16.mxu1 %v4543_v4  ;;  %4280 = vmatpush3.bf16.msra.mxu0 %v5009_v25 }
 0x1bb   :  { %4281 = vmatprep.subr.bf16.mxu0 %v4543_v4 }
 0x1bd   :  { %4421 = vmatpush3.bf16.msra.mxu1 %v4997_v21 }
 0x1be   :  { %4422 = vmatprep.subr.bf16.mxu1 %v4543_v4  ;;  %4283 = vmatpush3.bf16.msra.mxu0 %v5019_v26 }
 0x1bf   :  { %4284 = vmatprep.subr.bf16.mxu0 %v4543_v4 }
 0x1c1   :  { %4424 = vmatpush3.bf16.msra.mxu1 %v5009_v25 }
 0x1c2   :  { %4425 = vmatprep.subr.bf16.mxu1 %v4543_v4  ;;  %4286 = vmatpush3.bf16.msra.mxu0 %v5029_v31 }
 0x1c3   :  { %4287 = vmatprep.subr.bf16.mxu0 %v4543_v4 }
 0x1c5   :  { %4427 = vmatpush3.bf16.msra.mxu1 %v5019_v26 }
 0x1c6   :  { %4428 = vmatprep.subr.bf16.mxu1 %v4543_v4  ;;  %4289 = vmatpush3.bf16.msra.mxu0 %v5039_v41 }
 0x1c7   :  { %4290 = vmatprep.subr.bf16.mxu0 %v4543_v4 }
 0x1c9   :  { %4430 = vmatpush3.bf16.msra.mxu1 %v5029_v31 }
 0x1ca   :  { %4431 = vmatprep.subr.bf16.mxu1 %v4543_v4  ;;  %4292 = vmatpush3.bf16.msra.mxu0 %v5049_v53 }
 0x1cb   :  { %4293 = vmatprep.subr.bf16.mxu0 %v4543_v4 }
 0x1cd   :  { %4433 = vmatpush3.bf16.msra.mxu1 %v5039_v41  ;;  %3638 = vmatmul.mubr.msk.f32.vlgmr.msra.gmra.mrb[2].mxu0 %vm1314_vm3, %v4549_v45 }
 0x1ce   :  { %4434 = vmatprep.subr.bf16.mxu1 %v4543_v4  ;;  %4295 = vmatpush3.bf16.msra.mxu0 %v4595_v13 }
 0x1cf   :  { %3672 = vmatprep.mubr.msk.f32.mxu0 %vm4545_vm0, %v4546_v34  ;;  %4296 = vmatprep.subr.bf16.mxu0 %v4543_v4 }
 0x1d1   :  { %4436 = vmatpush3.bf16.msra.mxu1 %v5049_v53 }
 0x1d2   :  { %4437 = vmatprep.subr.bf16.mxu1 %v4543_v4  ;;  %4298 = vmatpush3.bf16.msra.mxu0 %v4598_v14 }
 0x1d3   :  { %4299 = vmatprep.subr.bf16.mxu0 %v4543_v4 }
 0x1d4   :  { %3848 = vmatmul.mubr.msk.f32.vlgmr.msra.gmra.mrb[2].mxu1 %vm1954_vm4, %v4549_v45 }
 0x1d5   :  { %4439 = vmatpush3.bf16.msra.mxu1 %v4595_v13  ;;  %3882 = vmatprep.mubr.msk.f32.mxu1 %vm4545_vm0, %v4546_v34 }
 0x1d6   :  { %4440 = vmatprep.subr.bf16.mxu1 %v4543_v4  ;;  %4301 = vmatpush3.bf16.msra.mxu0 %v4622_v27 }
 0x1d7   :  { %4302 = vmatprep.subr.bf16.mxu0 %v4543_v4 }
 0x1d9   :  { %4442 = vmatpush3.bf16.msra.mxu1 %v4598_v14 }
 0x1da   :  { %4443 = vmatprep.subr.bf16.mxu1 %v4543_v4  ;;  %4304 = vmatpush3.bf16.msra.mxu0 %v4655_v42 }
 0x1db   :  { %4305 = vmatprep.subr.bf16.mxu0 %v4543_v4 }
 0x1dd   :  { %4445 = vmatpush3.bf16.msra.mxu1 %v4622_v27 }
 0x1de   :  { %4446 = vmatprep.subr.bf16.mxu1 %v4543_v4  ;;  %4307 = vmatpush3.bf16.msra.mxu0 %v4683_v59 }
 0x1df   :  { %4308 = vmatprep.subr.bf16.mxu0 %v4543_v4 }
 0x1e1   :  { %4448 = vmatpush3.bf16.msra.mxu1 %v4655_v42 }
 0x1e2   :  { %4449 = vmatprep.subr.bf16.mxu1 %v4543_v4  ;;  %4310 = vmatpush3.bf16.msra.mxu0 %v4706_v8 }
 0x1e3   :  { %4311 = vmatprep.subr.bf16.mxu0 %v4543_v4 }
 0x1e5   :  { %4451 = vmatpush3.bf16.msra.mxu1 %v4683_v59 }
 0x1e6   :  { %4452 = vmatprep.subr.bf16.mxu1 %v4543_v4  ;;  %4313 = vmatpush3.bf16.msra.mxu0 %v4735_v38 }
 0x1e7   :  { %4314 = vmatprep.subr.bf16.mxu0 %v4543_v4 }
 0x1e9   :  { %4454 = vmatpush3.bf16.msra.mxu1 %v4706_v8 }
 0x1ea   :  { %4455 = vmatprep.subr.bf16.mxu1 %v4543_v4  ;;  %4316 = vmatpush3.bf16.msra.mxu0 %v4755_v55 }
 0x1ed   :  { %4457 = vmatpush3.bf16.msra.mxu1 %v4735_v38  ;;  %3673 = vmatmul.mubr.msk.f32.vlgmr.msra.gmra.mrb[2].mxu0 %vm1314_vm3, %v4549_v45 }
 0x1ee   :  { %4458 = vmatprep.subr.bf16.mxu1 %v4543_v4 }
 0x1f1   :  { %4460 = vmatpush3.bf16.msra.mxu1 %v4755_v55 }
 0x1f4   :  { %3883 = vmatmul.mubr.msk.f32.vlgmr.msra.gmra.mrb[2].mxu1 %vm1954_vm4, %v4549_v45 }
 0x200   :  { %v667_v13 = vpop.f32.mrb[0].mxu0 }
 0x201   :  { %2592 = vst.msk [vmem:[#allocation2] sm:$0xff] %vm2591_vm5, %v667_v13  ;;  %v3254_v14 = vpop.f32.mrb[1].mxu0 }
 0x207   :  { %v1307_v27 = vpop.f32.mrb[0].mxu1 }
 0x208   :  { %2594 = vrot.lane.b32.xlu1 %v1307_v27, %s4550_s1  ;;  %v3464_v4 = vpop.f32.mrb[1].mxu1 }
 0x27a   :  { %v2595_v34 = vpop.permute.xlu1 %2594 }
 0x27b   :  { %2598 = vst.msk [vmem:[#allocation2] sm:$0xff] %vm2597_vm6, %v2595_v34 }
 0x2c0   :  { %v1947_v42 = vpop.f32.mrb[2].mxu0 }
 0x2c1   :  { %2600 = vrot.lane.b32.xlu0 %v1947_v42, %s4551_s14  ;;  %v3674_v51 = vpop.f32.mrb[3].mxu0 }
 0x2c7   :  { %v2587_v57 = vpop.f32.mrb[2].mxu1 }
 0x2c8   :  { %2606 = vrot.lane.b32.xlu1 %v2587_v57, %s4552_s15  ;;  %v3884_v59 = vpop.f32.mrb[3].mxu1 }
 0x333   :  { %v2601_v8 = vpop.permute.xlu0 %2600 }
 0x334   :  { %2604 = vst.msk [vmem:[#allocation2] sm:$0xff] %vm2603_vm7, %v2601_v8 }
 0x33a   :  { %v2607_v11 = vpop.permute.xlu1 %2606 }
 0x33b   :  { %2610 = vst.msk [vmem:[#allocation2] sm:$0xff] %vm2609_vm8, %v2607_v11 }
 0x33c   :  { %4529 = shalt.err (!%p4526_p4)
}
 0x33d   :  { %s4530_s20 = scalar_lea.hbm %s5398_s2, 128 }
 0x33e   :  { %p4531_p5 = scmp.ne.s32.totalorder %s5398_s2, %s4530_s20  ;;  %p4534_p6 = scmp.lt.u32.totalorder %s4530_s20, %s5398_s2 }
 0x340   :  { %p4536_p7 = pnand %p4534_p6, %p4531_p5 }
 0x342   :  { %4539 = shalt.err (!%p4536_p7)
}
 0x343   :  { %2620 = dma.vmem_to_hbm [thread:$0]  %s2618_s0, 128, %s5398_s2, [#allocation3]  }
 0x344   :  { %4540 = dma.done.wait [#allocation3], 128  }
 0x345   :  { %4541 = vsyncadd [#allocation3], 4294967168 }
 0x346   :  { %2624 = vsyncpa [#allocation3], 1 }

</bundles_post_ra>
